<compile_context>
chip_gen: v7x
topology: tpu7x:2x2x1
jax: 0.10.0
libtpu: 0.0.40
codegen_flags: <defaults>
</compile_context>

<pallas_src>
import numpy as np
import jax
import jax.numpy as jnp
from jax.experimental import pallas as pl
from jax.experimental.pallas import tpu as pltpu

EPS = 1e-6


def _gmm_energy_kernel(z_ref, w_ref, muw_ref, addc_ref, out_ref):
    D = z_ref.shape[1]
    KD = w_ref.shape[1]
    K = KD // D

    z = z_ref[...]                                                        # [TB, D]
    # Whitened coordinates for all K mixtures at once (single MXU matmul).
    zw = jnp.dot(z, w_ref[...], preferred_element_type=jnp.float32)      # [TB, K*D]
    t = zw - muw_ref[...]                                                 # A_k^{-1}(z - mu_k), flattened over k
    # u[b, k*D+e] = logc_k/D - 0.5 * t^2   (so a sum over e gives result[b, k])
    u = addc_ref[...] - 0.5 * (t * t)                                     # [TB, K*D]  (VPU)
    # Transpose once on the idle XLU so the batch dimension lands on lanes;
    # [TB, 128] -> [128, TB] is the tile-aligned (mult-of-8 x mult-of-128) case.
    ut = jnp.transpose(u)                                                 # [K*D, TB]
    # Segmented sublane reduction per mixture: result_k[0, b] = logc_k - 0.5*mahala_kb
    rows = [jnp.sum(ut[k * D:(k + 1) * D, :], axis=0, keepdims=True)      # K x [1, TB]
            for k in range(K)]
    # Numerically stable -logsumexp over the K mixtures, staying lane-dense.
    m = rows[0]
    for r in rows[1:]:
        m = jnp.maximum(m, r)
    s = jnp.exp(rows[0] - m)
    for r in rows[1:]:
        s = s + jnp.exp(r - m)
    out_ref[...] = -(m + jnp.log(s))                                      # [1, TB]


def _glue_params(phi, mu, L):
    """Tiny per-mixture precompute (K*D^2 work) done in plain JAX."""
    phi = phi.astype(jnp.float32)
    mu = mu.astype(jnp.float32)
    L = L.astype(jnp.float32)
    K, D = mu.shape

    coef = 0.5 * D * np.log(2.0 * np.pi)
    logdet = 2.0 * jnp.sum(jnp.log(jnp.diagonal(L, axis1=1, axis2=2)), axis=1)    # [K]
    logc = jnp.log(phi) - coef - logdet                                           # [K]

    A = jnp.triu(L)                           # torch.triangular_solve default upper=True
    eye = jnp.eye(D, dtype=jnp.float32)
    # A_k^{-1} via triangular solve (better conditioned than explicit inverse).
    Ainv = jax.vmap(lambda a: jax.scipy.linalg.solve_triangular(a, eye, lower=False))(A)  # [K, D, D]

    # W[:, k*D:(k+1)*D] = A_k^{-T}  ->  (z @ W)[b, k*D+e] = (A_k^{-1} z_b)_e
    W = jnp.transpose(Ainv, (2, 0, 1)).reshape(D, K * D)                          # [D, K*D]
    # muW[k*D+e] = (A_k^{-1} mu_k)_e
    muw = jnp.einsum('ked,kd->ke', Ainv, mu).reshape(1, K * D)                    # [1, K*D]
    # logc spread evenly over each mixture's D lanes so it can be folded into the
    # segmented sum (avoids any scalar extract / extra matmul in the kernel).
    addc = jnp.repeat(logc / D, D)[None, :]                                       # [1, K*D]
    return W, muw, addc


def _call_kernel(z, W, muw, addc, grid_steps, tb):
    D = z.shape[1]
    KD = W.shape[1]
    return pl.pallas_call(
        _gmm_energy_kernel,
        out_shape=jax.ShapeDtypeStruct((1, grid_steps * tb), jnp.float32),
        grid_spec=pltpu.PrefetchScalarGridSpec(
            num_scalar_prefetch=0,
            grid=(grid_steps,),
            in_specs=[
                pl.BlockSpec((tb, D), lambda i: (i, 0)),     # z tile (streams from HBM)
                pl.BlockSpec((D, KD), lambda i: (0, 0)),     # packed whitening weights (resident)
                pl.BlockSpec((1, KD), lambda i: (0, 0)),     # mu @ W (resident)
                pl.BlockSpec((1, KD), lambda i: (0, 0)),     # (log phi - coef - logdet)/D per lane
            ],
            # Lane-dense output: each step writes a contiguous row segment of tb lanes.
            out_specs=pl.BlockSpec((1, tb), lambda i: (0, i)),
        ),
        compiler_params=pltpu.CompilerParams(dimension_semantics=("parallel",)),
    )(z, W, muw, addc)


def gmm_energy(z, phi, mu, L, *, tb=4096):
    """Per-sample GMM energy, matching the PyTorch module's forward. Output: [B] f32."""
    z = z.astype(jnp.float32)
    B, D = z.shape
    W, muw, addc = _glue_params(phi, mu, L)

    # Batch tile: multiple of 128 (lane-dense out row + tile-aligned in-kernel transpose).
    # 4096 amortizes the ~0.35us/grid-step overhead while staying well under the
    # default 32 MiB scoped VMEM on all generations (incl. v7x's 64 MiB physical).
    tb = max(128, (int(tb) // 128) * 128)

    n_full = B // tb
    rem = B - n_full * tb

    parts = []
    if n_full > 0:
        # Full tiles read z in place -- no padded copy of z is ever made.
        parts.append(_call_kernel(z, W, muw, addc, n_full, tb)[0])
    if rem > 0:
        # Ragged tail: pad only the trailing rows up to a multiple of 128 so the
        # in-kernel [rows,128] transpose stays tile-aligned, then one tiny call.
        rows = ((rem + 127) // 128) * 128
        z_tail = jax.lax.slice_in_dim(z, n_full * tb, B, axis=0)
        if rows != rem:
            z_tail = jnp.pad(z_tail, ((0, rows - rem), (0, 0)))
        parts.append(_call_kernel(z_tail, W, muw, addc, 1, rows)[0, :rem])
    return parts[0] if len(parts) == 1 else jnp.concatenate(parts, axis=0)


def gmm_energy_ref(z, phi, mu, L):
    """Pure-JAX replica of the PyTorch forward (including upper=True solve)."""
    B, D = z.shape
    logphi = jnp.log(phi)[:, None]
    coef = 0.5 * D * np.log(2.0 * np.pi)
    logdet = 2.0 * jnp.sum(jnp.log(jnp.diagonal(L, axis1=1, axis2=2)), axis=1)[:, None]
    diff = z[None] - mu[:, None]                       # [K, B, D]
    diffT = jnp.transpose(diff, (0, 2, 1))             # [K, D, B]
    A = jnp.triu(L)
    x = jax.vmap(lambda a, b: jax.scipy.linalg.solve_triangular(a, b, lower=False))(A, diffT)
    mahala = 0.5 * jnp.sum(x ** 2, axis=1)             # [K, B]
    result = logphi - coef - logdet - mahala
    return -jax.scipy.special.logsumexp(result, axis=0)


if __name__ == "__main__":
    key = jax.random.PRNGKey(0)
    kz, kp, km, ks = jax.random.split(key, 4)

    B, D, K = 16, 32, 4
    z = jax.random.normal(kz, (B, D), dtype=jnp.float32)

    # Deterministic, well-posed parameters with the shapes from __init__.
    # (The literal __init__ values phi=0 give log(0) = -inf energies, i.e. a
    #  degenerate model, so we use a "trained-like" deterministic init.)
    phi = jax.nn.softmax(jax.random.normal(kp, (K,), dtype=jnp.float32))
    mu = jax.random.normal(km, (K, D), dtype=jnp.float32)
    Arand = 0.1 * jax.random.normal(ks, (K, D, D), dtype=jnp.float32)
    sigma = jnp.einsum('kij,klj->kil', Arand, Arand) + jnp.eye(D, dtype=jnp.float32)[None]
    L = jnp.linalg.cholesky(sigma + EPS * jnp.eye(D, dtype=jnp.float32)[None])

    # Small-batch path (single padded tail tile).
    out = jax.block_until_ready(gmm_energy(z, phi, mu, L))
    ref = jax.block_until_ready(gmm_energy_ref(z, phi, mu, L))
    assert out.shape == (B,) and out.dtype == jnp.float32
    np.testing.assert_allclose(np.asarray(out), np.asarray(ref), rtol=1e-4, atol=1e-4)

    # Multi-tile path + ragged-tail pallas_call with a small tile.
    B2 = 300
    z2 = jax.random.normal(jax.random.PRNGKey(1), (B2, D), dtype=jnp.float32)
    out2 = jax.block_until_ready(gmm_energy(z2, phi, mu, L, tb=128))
    ref2 = jax.block_until_ready(gmm_energy_ref(z2, phi, mu, L))
    np.testing.assert_allclose(np.asarray(out2), np.asarray(ref2), rtol=1e-4, atol=1e-4)

    # Default big-tile (tb=4096) configuration.
    B3 = 2 * 4096 + 100
    z3 = jax.random.normal(jax.random.PRNGKey(2), (B3, D), dtype=jnp.float32)
    out3 = jax.block_until_ready(gmm_energy(z3, phi, mu, L))
    ref3 = jax.block_until_ready(gmm_energy_ref(z3, phi, mu, L))
    np.testing.assert_allclose(np.asarray(out3), np.asarray(ref3), rtol=1e-4, atol=1e-4)

    print("KERNEL_OK")
</pallas_src>

<mosaic_0001>
module attributes {stable_mosaic.version = 11 : i64} {
  func.func @_gmm_energy_kernel(%arg0: i32, %arg1: memref<128x32xf32, #tpu.memory_space<vmem>>, %arg2: memref<32x128xf32, #tpu.memory_space<vmem>>, %arg3: memref<1x128xf32, #tpu.memory_space<vmem>>, %arg4: memref<1x128xf32, #tpu.memory_space<vmem>>, %arg5: memref<1x128xf32, #tpu.memory_space<vmem>>) attributes {dimension_semantics = [#tpu.dimension_semantics<parallel>], iteration_bounds = array<i64: 1>, scalar_prefetch = 0 : i64, scratch_operands = 0 : i64, tpu.core_type = #tpu.core_type<tc>, window_params = [{transform_indices = @transform_0, window_bounds = array<i64: 128, 32>}, {pipeline_mode = #tpu.pipeline_mode<synchronous>, transform_indices = @transform_1, window_bounds = array<i64: 32, 128>}, {pipeline_mode = #tpu.pipeline_mode<synchronous>, transform_indices = @transform_2, window_bounds = array<i64: 1, 128>}, {pipeline_mode = #tpu.pipeline_mode<synchronous>, transform_indices = @transform_3, window_bounds = array<i64: 1, 128>}, {transform_indices = @transform_4, window_bounds = array<i64: 1, 128>}]} {
    %c0 = arith.constant 0 : index
    %c0_0 = arith.constant 0 : index
    %0 = vector.load %arg1[%c0, %c0_0] : memref<128x32xf32, #tpu.memory_space<vmem>>, vector<128x32xf32>
    %c0_1 = arith.constant 0 : index
    %c0_2 = arith.constant 0 : index
    %1 = vector.load %arg2[%c0_1, %c0_2] : memref<32x128xf32, #tpu.memory_space<vmem>>, vector<32x128xf32>
    %cst = arith.constant dense<0.000000e+00> : vector<128x128xf32>
    %2 = tpu.matmul %0, %1, %cst {dimension_numbers = #tpu.dot_dimension_numbers<[1], [0], [0], [1], [0, 0, 1, 1], [], []>} : vector<128x32xf32>, vector<32x128xf32>, vector<128x128xf32> -> vector<128x128xf32>
    %c0_3 = arith.constant 0 : index
    %c0_4 = arith.constant 0 : index
    %3 = vector.load %arg3[%c0_3, %c0_4] : memref<1x128xf32, #tpu.memory_space<vmem>>, vector<1x128xf32>
    %4 = vector.broadcast %3 : vector<1x128xf32> to vector<128x128xf32>
    %5 = arith.subf %2, %4 : vector<128x128xf32>
    %c0_5 = arith.constant 0 : index
    %c0_6 = arith.constant 0 : index
    %6 = vector.load %arg4[%c0_5, %c0_6] : memref<1x128xf32, #tpu.memory_space<vmem>>, vector<1x128xf32>
    %7 = arith.mulf %5, %5 : vector<128x128xf32>
    %cst_7 = arith.constant 5.000000e-01 : f32
    %8 = vector.broadcast %cst_7 : f32 to vector<128x128xf32>
    %9 = arith.mulf %8, %7 : vector<128x128xf32>
    %10 = vector.broadcast %6 : vector<1x128xf32> to vector<128x128xf32>
    %11 = arith.subf %10, %9 : vector<128x128xf32>
    %12 = tpu.transpose %11, [1, 0] : vector<128x128xf32> -> vector<128x128xf32>
    %13 = vector.extract_strided_slice %12 {offsets = [0, 0], sizes = [32, 128], strides = [1, 1]} : vector<128x128xf32> to vector<32x128xf32>
    %cst_8 = arith.constant dense<0.000000e+00> : vector<128xf32>
    %14 = vector.multi_reduction <add>, %13, %cst_8 [0] : vector<32x128xf32> to vector<128xf32>
    %15 = vector.shape_cast %14 : vector<128xf32> to vector<1x128xf32>
    %16 = vector.extract_strided_slice %12 {offsets = [32, 0], sizes = [32, 128], strides = [1, 1]} : vector<128x128xf32> to vector<32x128xf32>
    %cst_9 = arith.constant dense<0.000000e+00> : vector<128xf32>
    %17 = vector.multi_reduction <add>, %16, %cst_9 [0] : vector<32x128xf32> to vector<128xf32>
    %18 = vector.shape_cast %17 : vector<128xf32> to vector<1x128xf32>
    %19 = vector.extract_strided_slice %12 {offsets = [64, 0], sizes = [32, 128], strides = [1, 1]} : vector<128x128xf32> to vector<32x128xf32>
    %cst_10 = arith.constant dense<0.000000e+00> : vector<128xf32>
    %20 = vector.multi_reduction <add>, %19, %cst_10 [0] : vector<32x128xf32> to vector<128xf32>
    %21 = vector.shape_cast %20 : vector<128xf32> to vector<1x128xf32>
    %22 = vector.extract_strided_slice %12 {offsets = [96, 0], sizes = [32, 128], strides = [1, 1]} : vector<128x128xf32> to vector<32x128xf32>
    %cst_11 = arith.constant dense<0.000000e+00> : vector<128xf32>
    %23 = vector.multi_reduction <add>, %22, %cst_11 [0] : vector<32x128xf32> to vector<128xf32>
    %24 = vector.shape_cast %23 : vector<128xf32> to vector<1x128xf32>
    %25 = arith.maximumf %15, %18 : vector<1x128xf32>
    %26 = arith.maximumf %25, %21 : vector<1x128xf32>
    %27 = arith.maximumf %26, %24 : vector<1x128xf32>
    %28 = arith.subf %15, %27 : vector<1x128xf32>
    %29 = math.exp %28 : vector<1x128xf32>
    %30 = arith.subf %18, %27 : vector<1x128xf32>
    %31 = math.exp %30 : vector<1x128xf32>
    %32 = arith.addf %29, %31 : vector<1x128xf32>
    %33 = arith.subf %21, %27 : vector<1x128xf32>
    %34 = math.exp %33 : vector<1x128xf32>
    %35 = arith.addf %32, %34 : vector<1x128xf32>
    %36 = arith.subf %24, %27 : vector<1x128xf32>
    %37 = math.exp %36 : vector<1x128xf32>
    %38 = arith.addf %35, %37 : vector<1x128xf32>
    %39 = math.log %38 : vector<1x128xf32>
    %40 = arith.addf %27, %39 : vector<1x128xf32>
    %cst_12 = arith.constant 0.000000e+00 : f32
    %41 = vector.broadcast %cst_12 : f32 to vector<1x128xf32>
    %42 = arith.subf %41, %40 : vector<1x128xf32>
    %c0_13 = arith.constant 0 : index
    %c0_14 = arith.constant 0 : index
    %43 = vector.load %arg5[%c0_13, %c0_14] : memref<1x128xf32, #tpu.memory_space<vmem>>, vector<1x128xf32>
    tpu.vector_store %arg5[%c0_13, %c0_14], %42 {strides = array<i32>} : memref<1x128xf32, #tpu.memory_space<vmem>>, vector<1x128xf32>,
    return
  }
  func.func @transform_0(%arg0: i32) -> (i32, i32) {
    %c0_i32 = arith.constant 0 : i32
    %c0_i32_0 = arith.constant 0 : i32
    return %arg0, %c0_i32 : i32, i32
  }
  func.func @transform_1(%arg0: i32) -> (i32, i32) {
    %c0_i32 = arith.constant 0 : i32
    %c0_i32_0 = arith.constant 0 : i32
    %c0_i32_1 = arith.constant 0 : i32
    return %c0_i32, %c0_i32_0 : i32, i32
  }
  func.func @transform_2(%arg0: i32) -> (i32, i32) {
    %c0_i32 = arith.constant 0 : i32
    %c0_i32_0 = arith.constant 0 : i32
    %c0_i32_1 = arith.constant 0 : i32
    return %c0_i32, %c0_i32_0 : i32, i32
  }
  func.func @transform_3(%arg0: i32) -> (i32, i32) {
    %c0_i32 = arith.constant 0 : i32
    %c0_i32_0 = arith.constant 0 : i32
    %c0_i32_1 = arith.constant 0 : i32
    return %c0_i32, %c0_i32_0 : i32, i32
  }
  func.func @transform_4(%arg0: i32) -> (i32, i32) {
    %c0_i32 = arith.constant 0 : i32
    %c0_i32_0 = arith.constant 0 : i32
    return %c0_i32, %arg0 : i32, i32
  }
}

</mosaic_0001>

<bundles_post_ra>
// kernel: tpu_custom_call.1
= control target key start
LH: loop header
LB: loop body
LE: loop exit
PB: predicated region body
PF: predicated region fallthrough
CT: control target
= control target key end

     0   :  { %vm38_vm0 = vcmask 261120   ;;  %s688_s0 = inlined_call_operand.vmem [shape: f32[128,32], index: 0, kind: input, shape index: {}]   ;;  %s689_s1 = inlined_call_operand.vmem [shape: f32[32,128], index: 1, kind: input, shape index: {}]   ;;  %s690_s2 = inlined_call_operand.vmem [shape: f32[1,128], index: 2, kind: input, shape index: {}]   ;;  %s691_s3 = inlined_call_operand.vmem [shape: f32[1,128], index: 3, kind: input, shape index: {}]   ;;  %s692_s4 = inlined_call_operand.hbm [shape: f32[1,128], index: 4, kind: output, shape index: {}]  }
   0x1   :  { %v34_v0 = vld [vmem:[%s689_s1] sm:$0xff]  ;;  %v35_v1 = vld [vmem:[%s689_s1 + $0x8] sm:$0xff]  ;;  %v36_v2 = vld [vmem:[%s689_s1 + $0x10] sm:$0xff] }
   0x2   :  { %v485_v3 = vpack.c.bf16 %v35_v1, %v34_v0  ;;  %v37_v4 = vld [vmem:[%s689_s1 + $0x18] sm:$0xff]  ;;  %v18_v5 = vld [vmem:[%s688_s0] sm:$0xff] }
   0x3   :  { %v489_v6 = vpack.c.bf16 %v37_v4, %v36_v2  ;;  %461 = vmatprep.mubr.msk.f32.mxu0 %vm38_vm0, %v18_v5  ;;  %v26_v7 = vld [vmem:[%s688_s0 + $0x40] sm:$0xff] }
   0x4   :  { %486 = vmatprep.subr.bf16.mxu0 %v485_v3  ;;  %493 = vmatprep.subr.bf16.mxu1 %v485_v3 }
   0x5   :  { %488 = vmatpush3.bf16.msra.mxu0 %v485_v3  ;;  %495 = vmatpush3.bf16.msra.mxu1 %v485_v3 }
   0x6   :  { %490 = vmatprep.subr.bf16.mxu0 %v489_v6  ;;  %494 = vmatprep.subr.bf16.mxu1 %v489_v6 }
   0x7   :  { %473 = vmatprep.mubr.msk.f32.mxu1 %vm38_vm0, %v26_v7 }
   0x8   :  { %9 = vsyncpa [#allocation3], 0  ;;  %v19_v8 = vld [vmem:[%s688_s0 + $0x8] sm:$0xff]  ;;  %v20_v10 = vld [vmem:[%s688_s0 + $0x10] sm:$0xff] }
   0x9   :  { %492 = vmatpush3.bf16.msra.mxu0 %v489_v6  ;;  %496 = vmatpush3.bf16.msra.mxu1 %v489_v6  ;;  %v27_v9 = vld [vmem:[%s688_s0 + $0x48] sm:$0xff]  ;;  %v28_v11 = vld [vmem:[%s688_s0 + $0x50] sm:$0xff]  ;;  %v21_v12 = vld [vmem:[%s688_s0 + $0x18] sm:$0xff] }
   0xa   :  { %v29_v13 = vld [vmem:[%s688_s0 + $0x58] sm:$0xff]  ;;  %v22_v14 = vld [vmem:[%s688_s0 + $0x20] sm:$0xff]  ;;  %v23_v16 = vld [vmem:[%s688_s0 + $0x28] sm:$0xff] }
   0xb   :  { %v30_v15 = vld [vmem:[%s688_s0 + $0x60] sm:$0xff]  ;;  %v31_v17 = vld [vmem:[%s688_s0 + $0x68] sm:$0xff]  ;;  %v24_v18 = vld [vmem:[%s688_s0 + $0x30] sm:$0xff] }
   0xc   :  { %462 = vmatmul.mubr.msk.f32.vlgmr.msra.gmra.mrb[0].mxu0 %vm38_vm0, %v19_v8  ;;  %474 = vmatmul.mubr.msk.f32.vlgmr.msra.gmra.mrb[0].mxu1 %vm38_vm0, %v27_v9  ;;  %v32_v19 = vld [vmem:[%s688_s0 + $0x70] sm:$0xff]  ;;  %v25_v20 = vld [vmem:[%s688_s0 + $0x38] sm:$0xff]  ;;  %v637_v22 = vld [vmem:[%s690_s2] ss:$0 sm:$0xff]  ;;  %s532_s2 = smov [#allocation2]  }
   0xd   :  { %464 = vmatprep.mubr.msk.f32.mxu0 %vm38_vm0, %v20_v10  ;;  %476 = vmatprep.mubr.msk.f32.mxu1 %vm38_vm0, %v28_v11  ;;  %v33_v21 = vld [vmem:[%s688_s0 + $0x78] sm:$0xff]  ;;  %v644_v34 = vld [vmem:[%s691_s3] ss:$0 sm:$0xff]  ;;  %s407_s3 = sshll.u32 %s532_s2, 4  ;;  %s408_s3 = int_to_ptr.vmem [resolvable:$true] %s407_s3 }
   0xe   :  { %s508_s30 = scalar_lea.vmem %s408_s3, 16  ;;  %s512_s5 = scalar_lea.vmem %s408_s3, 32 }
   0xf   :  { %p509_p0 = scmp.ne.s32.totalorder %s408_s3, %s508_s30  ;;  %p513_p1 = scmp.lt.s32.totalorder %s408_s3, %s408_s3 }
  0x10   :  { %465 = vmatmul.mubr.msk.f32.gmra.mrb[2].mxu0 %vm38_vm0, %v21_v12  ;;  %477 = vmatmul.mubr.msk.f32.gmra.mrb[2].mxu1 %vm38_vm0, %v29_v13  ;;  %p514_p2 = scmp.lt.s32.totalorder %s512_s5, %s508_s30 }
  0x11   :  { %467 = vmatprep.mubr.msk.f32.mxu0 %vm38_vm0, %v22_v14  ;;  %479 = vmatprep.mubr.msk.f32.mxu1 %vm38_vm0, %v30_v15 }
  0x12   :  { %p515_p3 = por %p514_p2, %p513_p1 }
  0x14   :  { %468 = vmatmul.mubr.msk.f32.gmra.mrb[4].mxu0 %vm38_vm0, %v23_v16  ;;  %480 = vmatmul.mubr.msk.f32.gmra.mrb[4].mxu1 %vm38_vm0, %v31_v17  ;;  %p516_p4 = pnand %p515_p3, %p509_p0 }
  0x15   :  { %470 = vmatprep.mubr.msk.f32.mxu0 %vm38_vm0, %v24_v18  ;;  %482 = vmatprep.mubr.msk.f32.mxu1 %vm38_vm0, %v32_v19 }
  0x18   :  { %471 = vmatmul.mubr.msk.f32.gmra.mrb[6].mxu0 %vm38_vm0, %v25_v20  ;;  %483 = vmatmul.mubr.msk.f32.gmra.mrb[6].mxu1 %vm38_vm0, %v33_v21 }
  0xdf   :  { %v463_v23 = vpop.f32.mrb[0].mxu0  ;;  %v475_v24 = vpop.f32.mrb[0].mxu1 }
  0xe0   :  { %v240_v25 = vsub.f32 %v463_v23, %v637_v22  ;;  %v153_v26 = vpop.f32.mrb[1].mxu0  ;;  %v193_v27 = vpop.f32.mrb[1].mxu1  ;;  %v248_v9 = vsub.f32 %v475_v24, %v637_v22 }
  0xe1   :  { %v239_v28 = vsub.f32 %v153_v26, %v637_v22  ;;  %v247_v3 = vsub.f32 %v193_v27, %v637_v22 }
  0xe2   :  { %v257_v29 = vmul.f32 %v240_v25, %v240_v25  ;;  %v265_v12 = vmul.f32 %v248_v9, %v248_v9 }
  0xe3   :  { %v256_v30 = vmul.f32 %v239_v28, %v239_v28  ;;  %v466_v31 = vpop.f32.mrb[2].mxu0  ;;  %v478_v32 = vpop.f32.mrb[2].mxu1  ;;  %v264_v6 = vmul.f32 %v247_v3, %v247_v3 }
  0xe4   :  { %v163_v33 = vpop.f32.mrb[3].mxu0  ;;  %v203_v35 = vpop.f32.mrb[3].mxu1  ;;  %v273_v38 = vmul.f32 0.5, %v257_v29  ;;  %v242_v39 = vsub.f32 %v466_v31, %v637_v22  ;;  %v281_v16 = vmul.f32 0.5, %v265_v12  ;;  %v250_v17 = vsub.f32 %v478_v32, %v637_v22 }
  0xe5   :  { %v272_v36 = vmul.f32 0.5, %v256_v30  ;;  %v241_v37 = vsub.f32 %v163_v33, %v637_v22  ;;  %v280_v10 = vmul.f32 0.5, %v264_v6  ;;  %v249_v11 = vsub.f32 %v203_v35, %v637_v22 }
  0xe6   :  { %v259_v48 = vmul.f32 %v242_v39, %v242_v39  ;;  %v295_v49 = vsub.f32 %v644_v34, %v273_v38  ;;  %v267_v20 = vmul.f32 %v250_v17, %v250_v17  ;;  %v303_v21 = vsub.f32 %v644_v34, %v281_v16 }
  0xe7   :  { %v258_v40 = vmul.f32 %v241_v37, %v241_v37  ;;  %v294_v41 = vsub.f32 %v644_v34, %v272_v36  ;;  %v469_v42 = vpop.f32.mrb[4].mxu0  ;;  %v481_v43 = vpop.f32.mrb[4].mxu1  ;;  %v266_v14 = vmul.f32 %v249_v11, %v249_v11  ;;  %v302_v15 = vsub.f32 %v644_v34, %v280_v10 }
  0xe8   :  { %v173_v44 = vpop.f32.mrb[5].mxu0  ;;  %v213_v45 = vpop.f32.mrb[5].mxu1  ;;  %v275_v56 = vmul.f32 0.5, %v259_v48  ;;  %v244_v57 = vsub.f32 %v469_v42, %v637_v22  ;;  %v283_v25 = vmul.f32 0.5, %v267_v20  ;;  %v252_v26 = vsub.f32 %v481_v43, %v637_v22 }
  0xe9   :  { %v274_v46 = vmul.f32 0.5, %v258_v40  ;;  %310 = vxpose.xlu0.b32.start [1/16] %v294_v41, 128  ;;  %v243_v47 = vsub.f32 %v173_v44, %v637_v22  ;;  %v282_v18 = vmul.f32 0.5, %v266_v14  ;;  %v251_v19 = vsub.f32 %v213_v45, %v637_v22 }
  0xea   :  { %v261_v60 = vmul.f32 %v244_v57, %v244_v57  ;;  %v297_v61 = vsub.f32 %v644_v34, %v275_v56  ;;  %v269_v29 = vmul.f32 %v252_v26, %v252_v26  ;;  %v305_v30 = vsub.f32 %v644_v34, %v283_v25 }
  0xeb   :  { %v472_v50 = vpop.f32.mrb[6].mxu0  ;;  %v484_v51 = vpop.f32.mrb[6].mxu1  ;;  %v260_v54 = vmul.f32 %v243_v47, %v243_v47  ;;  %v296_v55 = vsub.f32 %v644_v34, %v274_v46  ;;  %v268_v23 = vmul.f32 %v251_v19, %v251_v19  ;;  %v304_v24 = vsub.f32 %v644_v34, %v282_v18 }
  0xec   :  { %v183_v52 = vpop.f32.mrb[7].mxu0  ;;  %v223_v53 = vpop.f32.mrb[7].mxu1  ;;  %v277_v0 = vmul.f32 0.5, %v261_v60  ;;  %v246_v1 = vsub.f32 %v472_v50, %v637_v22  ;;  %v285_v33 = vmul.f32 0.5, %v269_v29  ;;  %v254_v35 = vsub.f32 %v484_v51, %v637_v22 }
  0xed   :  { %311 = vxpose.xlu0.b32.cont [2/16] %v295_v49, 128  ;;  %v276_v58 = vmul.f32 0.5, %v260_v54  ;;  %v245_v59 = vsub.f32 %v183_v52, %v637_v22  ;;  %v284_v27 = vmul.f32 0.5, %v268_v23  ;;  %v253_v28 = vsub.f32 %v223_v53, %v637_v22 }
  0xee   :  { %v263_v4 = vmul.f32 %v246_v1, %v246_v1  ;;  %v299_v5 = vsub.f32 %v644_v34, %v277_v0  ;;  %v271_v37 = vmul.f32 %v254_v35, %v254_v35  ;;  %v307_v38 = vsub.f32 %v644_v34, %v285_v33 }
  0xef   :  { %v262_v62 = vmul.f32 %v245_v59, %v245_v59  ;;  %v298_v63 = vsub.f32 %v644_v34, %v276_v58  ;;  %v270_v31 = vmul.f32 %v253_v28, %v253_v28  ;;  %v306_v32 = vsub.f32 %v644_v34, %v284_v27 }
  0xf0   :  { %v279_v8 = vmul.f32 0.5, %v263_v4  ;;  %v287_v40 = vmul.f32 0.5, %v271_v37 }
  0xf1   :  { %312 = vxpose.xlu0.b32.cont [3/16] %v296_v55, 128  ;;  %v278_v2 = vmul.f32 0.5, %v262_v62  ;;  %v286_v36 = vmul.f32 0.5, %v270_v31 }
  0xf2   :  { %v301_v13 = vsub.f32 %v644_v34, %v279_v8  ;;  %v309_v41 = vsub.f32 %v644_v34, %v287_v40 }
  0xf3   :  { %v300_v7 = vsub.f32 %v644_v34, %v278_v2  ;;  %v308_v39 = vsub.f32 %v644_v34, %v286_v36 }
  0xf5   :  { %313 = vxpose.xlu0.b32.cont [4/16] %v297_v61, 128 }
  0xf9   :  { %314 = vxpose.xlu0.b32.cont [5/16] %v298_v63, 128 }
  0xfd   :  { %315 = vxpose.xlu0.b32.cont [6/16] %v299_v5, 128 }
 0x101   :  { %316 = vxpose.xlu0.b32.cont [7/16] %v300_v7, 128 }
 0x105   :  { %317 = vxpose.xlu0.b32.cont [8/16] %v301_v13, 128 }
 0x109   :  { %318 = vxpose.xlu0.b32.cont [9/16] %v302_v15, 128 }
 0x10d   :  { %319 = vxpose.xlu0.b32.cont [10/16] %v303_v21, 128 }
 0x111   :  { %320 = vxpose.xlu0.b32.cont [11/16] %v304_v24, 128 }
 0x115   :  { %321 = vxpose.xlu0.b32.cont [12/16] %v305_v30, 128 }
 0x119   :  { %322 = vxpose.xlu0.b32.cont [13/16] %v306_v32, 128 }
 0x11d   :  { %323 = vxpose.xlu0.b32.cont [14/16] %v307_v38, 128 }
 0x121   :  { %324 = vxpose.xlu0.b32.cont [15/16] %v308_v39, 128 }
 0x125   :  { %325 = vxpose.xlu0.b32.end [16/16] %v309_v41, 128 }
 0x169   :  { %v326_v42 = vpop.trf.xlu0 }
 0x16d   :  { %v327_v43 = vpop.trf.xlu0 }
 0x16e   :  { %v342_v53 = vadd.f32 %v327_v43, %v326_v42 }
 0x171   :  { %v328_v44 = vpop.trf.xlu0 }
 0x172   :  { %v343_v56 = vadd.f32 %v342_v53, %v328_v44 }
 0x175   :  { %v329_v45 = vpop.trf.xlu0 }
 0x176   :  { %v344_v59 = vadd.f32 %v343_v56, %v329_v45 }
 0x178   :  { %v345_v63 = vrot.slane %v344_v59, 4 }
 0x179   :  { %v330_v46 = vpop.trf.xlu0 }
 0x17a   :  { %v346_v3 = vadd.f32 %v345_v63, %v344_v59 }
 0x17c   :  { %v347_v7 = vrot.slane %v346_v3, 2 }
 0x17d   :  { %v331_v47 = vpop.trf.xlu0 }
 0x17e   :  { %v351_v51 = vadd.f32 %v331_v47, %v330_v46  ;;  %v348_v13 = vadd.f32 %v347_v7, %v346_v3 }
 0x180   :  { %v349_v18 = vrot.slane %v348_v13, 1 }
 0x181   :  { %v332_v22 = vpop.trf.xlu0 }
 0x182   :  { %v352_v54 = vadd.f32 %v351_v51, %v332_v22  ;;  %v350_v24 = vadd.f32 %v349_v18, %v348_v13 }
 0x185   :  { %v333_v48 = vpop.trf.xlu0 }
 0x186   :  { %v353_v57 = vadd.f32 %v352_v54, %v333_v48 }
 0x188   :  { %v354_v61 = vrot.slane %v353_v57, 4 }
 0x189   :  { %v334_v49 = vpop.trf.xlu0 }
 0x18a   :  { %v355_v1 = vadd.f32 %v354_v61, %v353_v57 }
 0x18c   :  { %v356_v5 = vrot.slane %v355_v1, 2 }
 0x18d   :  { %v335_v50 = vpop.trf.xlu0 }
 0x18e   :  { %v360_v55 = vadd.f32 %v335_v50, %v334_v49  ;;  %v357_v10 = vadd.f32 %v356_v5, %v355_v1 }
 0x190   :  { %v358_v16 = vrot.slane %v357_v10, 1 }
 0x191   :  { %v336_v52 = vpop.trf.xlu0 }
 0x192   :  { %v361_v58 = vadd.f32 %v360_v55, %v336_v52  ;;  %v359_v21 = vadd.f32 %v358_v16, %v357_v10 }
 0x194   :  { %v378_v27 = vmax.f32 %v350_v24, %v359_v21 }
 0x195   :  { %v337_v34 = vpop.trf.xlu0 }
 0x196   :  { %v362_v60 = vadd.f32 %v361_v58, %v337_v34 }
 0x198   :  { %v363_v0 = vrot.slane %v362_v60, 4 }
 0x199   :  { %v338_v62 = vpop.trf.xlu0 }
 0x19a   :  { %v364_v4 = vadd.f32 %v363_v0, %v362_v60 }
 0x19c   :  { %v365_v8 = vrot.slane %v364_v4, 2 }
 0x19d   :  { %v339_v2 = vpop.trf.xlu0 }
 0x19e   :  { %v369_v9 = vadd.f32 %v339_v2, %v338_v62  ;;  %v366_v14 = vadd.f32 %v365_v8, %v364_v4 }
 0x1a0   :  { %v367_v19 = vrot.slane %v366_v14, 1 }
 0x1a1   :  { %v340_v6 = vpop.trf.xlu0 }
 0x1a2   :  { %v370_v11 = vadd.f32 %v369_v9, %v340_v6  ;;  %v368_v25 = vadd.f32 %v367_v19, %v366_v14 }
 0x1a4   :  { %v379_v29 = vmax.f32 %v378_v27, %v368_v25 }
 0x1a5   :  { %v341_v12 = vpop.trf.xlu0 }
 0x1a6   :  { %v371_v15 = vadd.f32 %v370_v11, %v341_v12 }
 0x1a8   :  { %v372_v17 = vrot.slane %v371_v15, 4 }
 0x1aa   :  { %v373_v20 = vadd.f32 %v372_v17, %v371_v15 }
 0x1ac   :  { %v374_v23 = vrot.slane %v373_v20, 2 }
 0x1ae   :  { %v375_v26 = vadd.f32 %v374_v23, %v373_v20 }
 0x1b0   :  { %v376_v28 = vrot.slane %v375_v26, 1 }
 0x1b2   :  { %v377_v30 = vadd.f32 %v376_v28, %v375_v26 }
 0x1b4   :  { %v380_v31 = vmax.f32 %v379_v29, %v377_v30 }
 0x1b6   :  { %v381_v32 = vsub.f32 %v350_v24, %v380_v31  ;;  %v384_v33 = vsub.f32 %v359_v21, %v380_v31  ;;  %v388_v35 = vsub.f32 %v368_v25, %v380_v31  ;;  %v392_v36 = vsub.f32 %v377_v30, %v380_v31 }
 0x1b8   :  { %v382_v37 = vmul.f32 1.442695, %v381_v32  ;;  %v385_v38 = vmul.f32 1.442695, %v384_v33  ;;  %v389_v39 = vmul.f32 1.442695, %v388_v35 }
 0x1b9   :  { %v393_v40 = vmul.f32 1.442695, %v392_v36 }
 0x1ba   :  { %498 = vpow2.f32 %v382_v37 }
 0x1bb   :  { %500 = vpow2.f32 %v385_v38 }
 0x1bc   :  { %502 = vpow2.f32 %v389_v39 }
 0x1bd   :  { %504 = vpow2.f32 %v393_v40 }
 0x1c4   :  { %v499_v41 = vpop.eup %498 }
 0x1c5   :  { %v501_v42 = vpop.eup %500 }
 0x1c6   :  { %v387_v43 = vadd.f32 %v501_v42, %v499_v41  ;;  %v503_v44 = vpop.eup %502 }
 0x1c7   :  { %v505_v46 = vpop.eup %504 }
 0x1c8   :  { %v391_v45 = vadd.f32 %v503_v44, %v387_v43 }
 0x1ca   :  { %v395_v47 = vadd.f32 %v505_v46, %v391_v45 }
 0x1cc   :  { %506 = vlog2.f32 %v395_v47 }
 0x1d6   :  { %v507_v22 = vpop.eup %506 }
 0x1d7   :  { %v397_v48 = vmul.f32 0.6931472, %v507_v22 }
 0x1d9   :  { %v398_v49 = vadd.f32 %v397_v48, %v380_v31 }
 0x1db   :  { %v399_v50 = vsub.f32 0.0, %v398_v49 }
 0x1dd   :  { %400 = vst [vmem:[#allocation2] sm:$0x1] %v399_v50 }
 0x1de   :  { %519 = shalt.err (!%p516_p4)
}
 0x1df   :  { %s520_s8 = scalar_lea.hbm %s692_s4, 16 }
 0x1e0   :  { %p521_p5 = scmp.ne.s32.totalorder %s692_s4, %s520_s8  ;;  %p524_p6 = scmp.lt.u32.totalorder %s520_s8, %s692_s4 }
 0x1e2   :  { %p526_p7 = pnand %p524_p6, %p521_p5 }
 0x1e4   :  { %529 = shalt.err (!%p526_p7)
}
 0x1e5   :  { %410 = dma.vmem_to_hbm [thread:$0]  %s408_s3, 16, %s692_s4, [#allocation3]  }
 0x1e6   :  { %530 = dma.done.wait [#allocation3], 16  }
 0x1e7   :  { %531 = vsyncadd [#allocation3], 4294967280 }
 0x1e8   :  { %414 = vsyncpa [#allocation3], 1 }

</bundles_post_ra>
